<compile_context>
chip_gen: v7x
topology: tpu7x:2x2x1
jax: 0.10.0
libtpu: 0.0.40
codegen_flags: <defaults>
</compile_context>

<pallas_src>
import jax
import jax.numpy as jnp
from jax.experimental import pallas as pl
from jax.experimental.pallas import tpu as pltpu


def _round_up(x, m):
    return (x + m - 1) // m * m


def _pick_batch_tile(b, block_b):
    """Pick (tm, b_pad): tm is a 128-multiple dividing b_pad, b_pad minimal."""
    n = _round_up(b, 128) // 128            # number of 128-lane batch groups
    max_groups = max(block_b // 128, 1)
    # largest divisor of n that fits in block_b -> zero extra padding
    d = max(g for g in range(1, min(n, max_groups) + 1) if n % g == 0)
    # v7x megacore: make sure the "parallel" batch axis has >= 2 grid steps
    if d == n and n >= 2:
        d = max(g for g in range(1, n // 2 + 1) if n % g == 0)
    return 128 * d, 128 * n


def _critic_kernel(state_ref, act_ref,
                   w1s_ref, wf_ref, b1_ref,
                   w2h_ref, b2_ref,
                   w3h_ref, b3_ref,
                   w4h_ref, b4_ref,
                   out_ref):
    """One batch tile.  Activations are transposed: [features, batch_tile]."""
    f32 = jnp.float32
    cdt = state_ref.dtype                               # MXU compute dtype (bf16)

    H1 = b1_ref.shape[0]
    H2 = b2_ref.shape[0]
    H3 = b3_ref.shape[0]

    # --- in-kernel feature compute (f32 on the VPU) -------------------------
    a = act_ref[...]                                    # [A, TM] f32
    feats = jnp.concatenate([a, a * a, jnp.abs(a)], axis=0).astype(cdt)  # [3A, TM]

    # --- one stacked feature dot serving all four layers ---------------------
    fdot = jnp.dot(wf_ref[...], feats, preferred_element_type=f32)  # [H1+H2+H3+1, TM]

    # --- layer 1: relu(W1_s @ state + W1_feat @ feats + b1) ------------------
    h = jnp.dot(w1s_ref[...], state_ref[...], preferred_element_type=f32)
    h = jnp.maximum(h + fdot[:H1] + b1_ref[...], 0.0).astype(cdt)          # [H1, TM]

    # --- layer 2 --------------------------------------------------------------
    h = jnp.dot(w2h_ref[...], h, preferred_element_type=f32)
    h = jnp.maximum(h + fdot[H1:H1 + H2] + b2_ref[...], 0.0).astype(cdt)   # [H2, TM]

    # --- layer 3 --------------------------------------------------------------
    h = jnp.dot(w3h_ref[...], h, preferred_element_type=f32)
    h = jnp.maximum(h + fdot[H1 + H2:H1 + H2 + H3] + b3_ref[...], 0.0).astype(cdt)

    # --- last layer (M=1): VPU multiply + sublane reduction, no MXU dot ------
    qh = jnp.sum(w4h_ref[...].astype(f32) * h.astype(f32), axis=0, keepdims=True)
    q = qh + fdot[H1 + H2 + H3:] + b4_ref[...]                              # [1, TM]

    out_ref[...] = q.astype(out_ref.dtype)              # lane-dense store


def _prepare_params(params, input_dims, action_dims, compute_dtype):
    """Split/remap PyTorch-layout weights ([out, in]) into kernel operands."""
    D, A = input_dims, action_dims
    f32 = jnp.float32
    cdt = compute_dtype
    w1, w2, w3, w4 = params["w1"], params["w2"], params["w3"], params["w4"]
    H1, H2, H3 = w1.shape[0], w2.shape[0], w3.shape[0]

    # loud failures instead of silent wrong answers
    assert w1.shape == (H1, D + 3 * A), (w1.shape, D, A)
    assert w2.shape == (H2, H1 + 3 * A), (w2.shape, H1, A)
    assert w3.shape == (H3, H2 + 3 * A), (w3.shape, H2, A)
    assert w4.shape == (1, H3 + 2 * A), (w4.shape, H3, A)

    # Stacked feature-weight operand; columns ordered (a, a^2, |a|) to match the
    # in-kernel feats block.  Last layer has no plain-`a` term -> zero columns,
    # and its (|a|, a^2) columns are swapped into (a^2, |a|) position.
    w1f = w1[:, D:]                                     # (a, a^2, |a|) columns
    w2f = w2[:, H1:]
    w3f = w3[:, H2:]
    w4f = jnp.concatenate(
        [jnp.zeros((1, A), w4.dtype),                   # unused plain-`a` block
         w4[:, H3 + A:H3 + 2 * A],                      # a^2 columns
         w4[:, H3:H3 + A]],                             # |a| columns
        axis=1)
    wf = jnp.concatenate([w1f, w2f, w3f, w4f], axis=0).astype(cdt)  # [H1+H2+H3+1, 3A]

    return {
        "w1s": w1[:, :D].astype(cdt),                   # [H1, D]
        "wf": wf,
        "b1": params["b1"].reshape(H1, 1).astype(f32),
        "w2h": w2[:, :H1].astype(cdt),                  # [H2, H1]
        "b2": params["b2"].reshape(H2, 1).astype(f32),
        "w3h": w3[:, :H2].astype(cdt),                  # [H3, H2]
        "b3": params["b3"].reshape(H3, 1).astype(f32),
        "w4h": w4[:, :H3].reshape(H3, 1).astype(cdt),   # column vector, VPU path
        "b4": params["b4"].reshape(1, 1).astype(f32),
    }


def critic_forward(state, action, params, *, compute_dtype=jnp.bfloat16,
                   block_b=2048):
    """Q(s, a) for a batch.  state: [B, D], action: [B, A] -> [B, 1] f32."""
    B, D = state.shape
    A = action.shape[1]

    tm, b_pad = _pick_batch_tile(B, block_b)

    # Single fused cast+transpose+pad per input; batch lands on the lane axis.
    state_t = jnp.pad(state.astype(compute_dtype).T, ((0, 0), (0, b_pad - B)))
    act_t = jnp.pad(action.astype(jnp.float32).T, ((0, 0), (0, b_pad - B)))

    kp = _prepare_params(params, D, A, compute_dtype)
    H1, H2, H3 = kp["b1"].shape[0], kp["b2"].shape[0], kp["b3"].shape[0]

    args = (state_t, act_t,
            kp["w1s"], kp["wf"], kp["b1"],
            kp["w2h"], kp["b2"],
            kp["w3h"], kp["b3"],
            kp["w4h"], kp["b4"])

    def resident(arr):
        # full-array block + constant index map -> stays in VMEM across the grid
        return pl.BlockSpec(arr.shape, lambda i: (0, 0))

    in_specs = [
        pl.BlockSpec((D, tm), lambda i: (0, i)),
        pl.BlockSpec((A, tm), lambda i: (0, i)),
    ] + [resident(a) for a in args[2:]]

    flops = 2 * b_pad * (H1 * (D + 3 * A) + H2 * (H1 + 3 * A)
                         + H3 * (H2 + 3 * A) + (H3 + 2 * A))
    param_bytes = sum(int(v.size) * v.dtype.itemsize for v in kp.values())
    bytes_accessed = b_pad * (D * 2 + A * 4 + 4) + param_bytes

    out = pl.pallas_call(
        _critic_kernel,
        out_shape=jax.ShapeDtypeStruct((1, b_pad), jnp.float32),
        grid=(b_pad // tm,),
        in_specs=in_specs,
        out_specs=pl.BlockSpec((1, tm), lambda i: (0, i)),
        compiler_params=pltpu.CompilerParams(
            dimension_semantics=("parallel",)),
        cost_estimate=pl.CostEstimate(flops=flops, transcendentals=0,
                                      bytes_accessed=bytes_accessed),
    )(*args)

    return out[0, :B].reshape(B, 1)


def init_params(key, input_dims, action_dims, input_out, layer1_dims, layer2_dims):
    """nn.Linear-style U(-1/sqrt(fan_in), 1/sqrt(fan_in)) init, PyTorch layout
    (weights [out_features, in_features], biases [out_features])."""
    A = action_dims
    sizes = [
        ("w1", "b1", input_dims + 3 * A, input_out),
        ("w2", "b2", input_out + 3 * A, layer1_dims),
        ("w3", "b3", layer1_dims + 3 * A, layer2_dims),
        ("w4", "b4", layer2_dims + 2 * A, 1),
    ]
    params = {}
    for wname, bname, fan_in, fan_out in sizes:
        key, kw, kb = jax.random.split(key, 3)
        bound = 1.0 / jnp.sqrt(jnp.float32(fan_in))
        params[wname] = jax.random.uniform(
            kw, (fan_out, fan_in), jnp.float32, -bound, bound)
        params[bname] = jax.random.uniform(
            kb, (fan_out,), jnp.float32, -bound, bound)
    return params


def critic_reference(state, action, params, *, compute_dtype=jnp.bfloat16):
    """Pure-JAX reference of the PyTorch forward pass with the same
    mixed-precision discipline as the kernel (bf16 matmul operands,
    f32 feature computation / accumulation / elementwise)."""
    f32 = jnp.float32
    a = action.astype(f32)
    a2, aa = a * a, jnp.abs(a)

    def lin(x, w, b):
        return (jnp.dot(x.astype(compute_dtype), w.astype(compute_dtype).T,
                        preferred_element_type=f32)
                + b.astype(f32))

    x = jnp.concatenate([state.astype(f32), a, a2, aa], axis=1)
    h = jax.nn.relu(lin(x, params["w1"], params["b1"]))
    x = jnp.concatenate([h, a, a2, aa], axis=1)
    h = jax.nn.relu(lin(x, params["w2"], params["b2"]))
    x = jnp.concatenate([h, a, a2, aa], axis=1)
    h = jax.nn.relu(lin(x, params["w3"], params["b3"]))
    x = jnp.concatenate([h, aa, a2], axis=1)
    return lin(x, params["w4"], params["b4"])


if __name__ == "__main__":
    # small shapes consistent with the module's constructor
    input_dims = 8
    action_dims = 4
    input_out = 32
    layer1_dims = 32
    layer2_dims = 32

    key = jax.random.PRNGKey(0)
    key, kp = jax.random.split(key)
    params = init_params(kp, input_dims, action_dims,
                         input_out, layer1_dims, layer2_dims)

    # check 1: tiny batch (single grid step)
    key, ks, ka = jax.random.split(key, 3)
    state = jax.random.normal(ks, (8, input_dims), jnp.float32)
    action = jax.random.normal(ka, (8, action_dims), jnp.float32)
    out = jax.block_until_ready(critic_forward(state, action, params))
    ref = critic_reference(state, action, params)
    assert out.shape == (8, 1), out.shape
    assert jnp.allclose(out, ref, atol=1e-3, rtol=1e-3), (out, ref)

    # check 2: multi-tile batch (exercises the grid + VMEM-resident weights)
    key, ks, ka = jax.random.split(key, 3)
    state = jax.random.normal(ks, (384, input_dims), jnp.float32)
    action = jax.random.normal(ka, (384, action_dims), jnp.float32)
    out = jax.block_until_ready(critic_forward(state, action, params))
    ref = critic_reference(state, action, params)
    assert out.shape == (384, 1), out.shape
    assert jnp.allclose(out, ref, atol=1e-3, rtol=1e-3), (out, ref)

    print("KERNEL_OK")
</pallas_src>

<mosaic_0001>
module attributes {stable_mosaic.version = 11 : i64} {
  func.func @_critic_kernel(%arg0: i32, %arg1: memref<8x128xbf16, #tpu.memory_space<vmem>>, %arg2: memref<4x128xf32, #tpu.memory_space<vmem>>, %arg3: memref<32x8xbf16, #tpu.memory_space<vmem>>, %arg4: memref<97x12xbf16, #tpu.memory_space<vmem>>, %arg5: memref<32x1xf32, #tpu.memory_space<vmem>>, %arg6: memref<32x32xbf16, #tpu.memory_space<vmem>>, %arg7: memref<32x1xf32, #tpu.memory_space<vmem>>, %arg8: memref<32x32xbf16, #tpu.memory_space<vmem>>, %arg9: memref<32x1xf32, #tpu.memory_space<vmem>>, %arg10: memref<32x1xbf16, #tpu.memory_space<vmem>>, %arg11: memref<1x1xf32, #tpu.memory_space<vmem>>, %arg12: memref<1x128xf32, #tpu.memory_space<vmem>>) attributes {dimension_semantics = [#tpu.dimension_semantics<parallel>], iteration_bounds = array<i64: 1>, scalar_prefetch = 0 : i64, scratch_operands = 0 : i64, tpu.core_type = #tpu.core_type<tc>, window_params = [{transform_indices = @transform_0, window_bounds = array<i64: 8, 128>}, {transform_indices = @transform_1, window_bounds = array<i64: 4, 128>}, {pipeline_mode = #tpu.pipeline_mode<synchronous>, transform_indices = @transform_2, window_bounds = array<i64: 32, 8>}, {pipeline_mode = #tpu.pipeline_mode<synchronous>, transform_indices = @transform_3, window_bounds = array<i64: 97, 12>}, {pipeline_mode = #tpu.pipeline_mode<synchronous>, transform_indices = @transform_4, window_bounds = array<i64: 32, 1>}, {pipeline_mode = #tpu.pipeline_mode<synchronous>, transform_indices = @transform_5, window_bounds = array<i64: 32, 32>}, {pipeline_mode = #tpu.pipeline_mode<synchronous>, transform_indices = @transform_6, window_bounds = array<i64: 32, 1>}, {pipeline_mode = #tpu.pipeline_mode<synchronous>, transform_indices = @transform_7, window_bounds = array<i64: 32, 32>}, {pipeline_mode = #tpu.pipeline_mode<synchronous>, transform_indices = @transform_8, window_bounds = array<i64: 32, 1>}, {pipeline_mode = #tpu.pipeline_mode<synchronous>, transform_indices = @transform_9, window_bounds = array<i64: 32, 1>}, {pipeline_mode = #tpu.pipeline_mode<synchronous>, transform_indices = @transform_10, window_bounds = array<i64: 1, 1>}, {transform_indices = @transform_11, window_bounds = array<i64: 1, 128>}]} {
    %c0 = arith.constant 0 : index
    %c0_0 = arith.constant 0 : index
    %0 = vector.load %arg2[%c0, %c0_0] : memref<4x128xf32, #tpu.memory_space<vmem>>, vector<4x128xf32>
    %1 = arith.mulf %0, %0 : vector<4x128xf32>
    %2 = math.absf %0 : vector<4x128xf32>
    %3 = tpu.concatenate %0, %1, %2 in 0 : vector<4x128xf32>, vector<4x128xf32>, vector<4x128xf32> -> vector<12x128xf32>
    %4 = arith.truncf %3 : vector<12x128xf32> to vector<12x128xbf16>
    %c0_1 = arith.constant 0 : index
    %c0_2 = arith.constant 0 : index
    %5 = vector.load %arg4[%c0_1, %c0_2] : memref<97x12xbf16, #tpu.memory_space<vmem>>, vector<97x12xbf16>
    %cst = arith.constant dense<0.000000e+00> : vector<97x128xf32>
    %6 = tpu.matmul %5, %4, %cst {dimension_numbers = #tpu.dot_dimension_numbers<[1], [0], [0], [1], [0, 0, 1, 1], [], []>} : vector<97x12xbf16>, vector<12x128xbf16>, vector<97x128xf32> -> vector<97x128xf32>
    %c0_3 = arith.constant 0 : index
    %c0_4 = arith.constant 0 : index
    %7 = vector.load %arg3[%c0_3, %c0_4] : memref<32x8xbf16, #tpu.memory_space<vmem>>, vector<32x8xbf16>
    %c0_5 = arith.constant 0 : index
    %c0_6 = arith.constant 0 : index
    %8 = vector.load %arg1[%c0_5, %c0_6] : memref<8x128xbf16, #tpu.memory_space<vmem>>, vector<8x128xbf16>
    %cst_7 = arith.constant dense<0.000000e+00> : vector<32x128xf32>
    %9 = tpu.matmul %7, %8, %cst_7 {dimension_numbers = #tpu.dot_dimension_numbers<[1], [0], [0], [1], [0, 0, 1, 1], [], []>} : vector<32x8xbf16>, vector<8x128xbf16>, vector<32x128xf32> -> vector<32x128xf32>
    %10 = vector.extract_strided_slice %6 {offsets = [0, 0], sizes = [32, 128], strides = [1, 1]} : vector<97x128xf32> to vector<32x128xf32>
    %11 = arith.addf %9, %10 : vector<32x128xf32>
    %c0_8 = arith.constant 0 : index
    %c0_9 = arith.constant 0 : index
    %12 = vector.load %arg5[%c0_8, %c0_9] : memref<32x1xf32, #tpu.memory_space<vmem>>, vector<32x1xf32>
    %13 = vector.broadcast %12 : vector<32x1xf32> to vector<32x128xf32>
    %14 = arith.addf %11, %13 : vector<32x128xf32>
    %cst_10 = arith.constant 0.000000e+00 : f32
    %15 = vector.broadcast %cst_10 : f32 to vector<32x128xf32>
    %16 = arith.maximumf %14, %15 : vector<32x128xf32>
    %17 = arith.truncf %16 : vector<32x128xf32> to vector<32x128xbf16>
    %c0_11 = arith.constant 0 : index
    %c0_12 = arith.constant 0 : index
    %18 = vector.load %arg6[%c0_11, %c0_12] : memref<32x32xbf16, #tpu.memory_space<vmem>>, vector<32x32xbf16>
    %cst_13 = arith.constant dense<0.000000e+00> : vector<32x128xf32>
    %19 = tpu.matmul %18, %17, %cst_13 {dimension_numbers = #tpu.dot_dimension_numbers<[1], [0], [0], [1], [0, 0, 1, 1], [], []>} : vector<32x32xbf16>, vector<32x128xbf16>, vector<32x128xf32> -> vector<32x128xf32>
    %20 = vector.extract_strided_slice %6 {offsets = [32, 0], sizes = [32, 128], strides = [1, 1]} : vector<97x128xf32> to vector<32x128xf32>
    %21 = arith.addf %19, %20 : vector<32x128xf32>
    %c0_14 = arith.constant 0 : index
    %c0_15 = arith.constant 0 : index
    %22 = vector.load %arg7[%c0_14, %c0_15] : memref<32x1xf32, #tpu.memory_space<vmem>>, vector<32x1xf32>
    %23 = vector.broadcast %22 : vector<32x1xf32> to vector<32x128xf32>
    %24 = arith.addf %21, %23 : vector<32x128xf32>
    %cst_16 = arith.constant 0.000000e+00 : f32
    %25 = vector.broadcast %cst_16 : f32 to vector<32x128xf32>
    %26 = arith.maximumf %24, %25 : vector<32x128xf32>
    %27 = arith.truncf %26 : vector<32x128xf32> to vector<32x128xbf16>
    %c0_17 = arith.constant 0 : index
    %c0_18 = arith.constant 0 : index
    %28 = vector.load %arg8[%c0_17, %c0_18] : memref<32x32xbf16, #tpu.memory_space<vmem>>, vector<32x32xbf16>
    %cst_19 = arith.constant dense<0.000000e+00> : vector<32x128xf32>
    %29 = tpu.matmul %28, %27, %cst_19 {dimension_numbers = #tpu.dot_dimension_numbers<[1], [0], [0], [1], [0, 0, 1, 1], [], []>} : vector<32x32xbf16>, vector<32x128xbf16>, vector<32x128xf32> -> vector<32x128xf32>
    %30 = vector.extract_strided_slice %6 {offsets = [64, 0], sizes = [32, 128], strides = [1, 1]} : vector<97x128xf32> to vector<32x128xf32>
    %31 = arith.addf %29, %30 : vector<32x128xf32>
    %c0_20 = arith.constant 0 : index
    %c0_21 = arith.constant 0 : index
    %32 = vector.load %arg9[%c0_20, %c0_21] : memref<32x1xf32, #tpu.memory_space<vmem>>, vector<32x1xf32>
    %33 = vector.broadcast %32 : vector<32x1xf32> to vector<32x128xf32>
    %34 = arith.addf %31, %33 : vector<32x128xf32>
    %cst_22 = arith.constant 0.000000e+00 : f32
    %35 = vector.broadcast %cst_22 : f32 to vector<32x128xf32>
    %36 = arith.maximumf %34, %35 : vector<32x128xf32>
    %37 = arith.truncf %36 : vector<32x128xf32> to vector<32x128xbf16>
    %c0_23 = arith.constant 0 : index
    %c0_24 = arith.constant 0 : index
    %38 = vector.load %arg10[%c0_23, %c0_24] : memref<32x1xbf16, #tpu.memory_space<vmem>>, vector<32x1xbf16>
    %39 = arith.extf %38 : vector<32x1xbf16> to vector<32x1xf32>
    %40 = arith.extf %37 : vector<32x128xbf16> to vector<32x128xf32>
    %41 = vector.broadcast %39 : vector<32x1xf32> to vector<32x128xf32>
    %42 = arith.mulf %41, %40 : vector<32x128xf32>
    %cst_25 = arith.constant dense<0.000000e+00> : vector<128xf32>
    %43 = vector.multi_reduction <add>, %42, %cst_25 [0] : vector<32x128xf32> to vector<128xf32>
    %44 = vector.shape_cast %43 : vector<128xf32> to vector<1x128xf32>
    %45 = vector.extract_strided_slice %6 {offsets = [96, 0], sizes = [1, 128], strides = [1, 1]} : vector<97x128xf32> to vector<1x128xf32>
    %46 = arith.addf %44, %45 : vector<1x128xf32>
    %c0_26 = arith.constant 0 : index
    %c0_27 = arith.constant 0 : index
    %47 = vector.load %arg11[%c0_26, %c0_27] : memref<1x1xf32, #tpu.memory_space<vmem>>, vector<1x1xf32>
    %48 = vector.broadcast %47 : vector<1x1xf32> to vector<1x128xf32>
    %49 = arith.addf %46, %48 : vector<1x128xf32>
    %c0_28 = arith.constant 0 : index
    %c0_29 = arith.constant 0 : index
    %50 = vector.load %arg12[%c0_28, %c0_29] : memref<1x128xf32, #tpu.memory_space<vmem>>, vector<1x128xf32>
    tpu.vector_store %arg12[%c0_28, %c0_29], %49 {strides = array<i32>} : memref<1x128xf32, #tpu.memory_space<vmem>>, vector<1x128xf32>,
    return
  }
  func.func @transform_0(%arg0: i32) -> (i32, i32) {
    %c0_i32 = arith.constant 0 : i32
    %c0_i32_0 = arith.constant 0 : i32
    return %c0_i32, %arg0 : i32, i32
  }
  func.func @transform_1(%arg0: i32) -> (i32, i32) {
    %c0_i32 = arith.constant 0 : i32
    %c0_i32_0 = arith.constant 0 : i32
    return %c0_i32, %arg0 : i32, i32
  }
  func.func @transform_2(%arg0: i32) -> (i32, i32) {
    %c0_i32 = arith.constant 0 : i32
    %c0_i32_0 = arith.constant 0 : i32
    %c0_i32_1 = arith.constant 0 : i32
    return %c0_i32, %c0_i32_0 : i32, i32
  }
  func.func @transform_3(%arg0: i32) -> (i32, i32) {
    %c0_i32 = arith.constant 0 : i32
    %c0_i32_0 = arith.constant 0 : i32
    %c0_i32_1 = arith.constant 0 : i32
    return %c0_i32, %c0_i32_0 : i32, i32
  }
  func.func @transform_4(%arg0: i32) -> (i32, i32) {
    %c0_i32 = arith.constant 0 : i32
    %c0_i32_0 = arith.constant 0 : i32
    %c0_i32_1 = arith.constant 0 : i32
    return %c0_i32, %c0_i32_0 : i32, i32
  }
  func.func @transform_5(%arg0: i32) -> (i32, i32) {
    %c0_i32 = arith.constant 0 : i32
    %c0_i32_0 = arith.constant 0 : i32
    %c0_i32_1 = arith.constant 0 : i32
    return %c0_i32, %c0_i32_0 : i32, i32
  }
  func.func @transform_6(%arg0: i32) -> (i32, i32) {
    %c0_i32 = arith.constant 0 : i32
    %c0_i32_0 = arith.constant 0 : i32
    %c0_i32_1 = arith.constant 0 : i32
    return %c0_i32, %c0_i32_0 : i32, i32
  }
  func.func @transform_7(%arg0: i32) -> (i32, i32) {
    %c0_i32 = arith.constant 0 : i32
    %c0_i32_0 = arith.constant 0 : i32
    %c0_i32_1 = arith.constant 0 : i32
    return %c0_i32, %c0_i32_0 : i32, i32
  }
  func.func @transform_8(%arg0: i32) -> (i32, i32) {
    %c0_i32 = arith.constant 0 : i32
    %c0_i32_0 = arith.constant 0 : i32
    %c0_i32_1 = arith.constant 0 : i32
    return %c0_i32, %c0_i32_0 : i32, i32
  }
  func.func @transform_9(%arg0: i32) -> (i32, i32) {
    %c0_i32 = arith.constant 0 : i32
    %c0_i32_0 = arith.constant 0 : i32
    %c0_i32_1 = arith.constant 0 : i32
    return %c0_i32, %c0_i32_0 : i32, i32
  }
  func.func @transform_10(%arg0: i32) -> (i32, i32) {
    %c0_i32 = arith.constant 0 : i32
    %c0_i32_0 = arith.constant 0 : i32
    %c0_i32_1 = arith.constant 0 : i32
    return %c0_i32, %c0_i32_0 : i32, i32
  }
  func.func @transform_11(%arg0: i32) -> (i32, i32) {
    %c0_i32 = arith.constant 0 : i32
    %c0_i32_0 = arith.constant 0 : i32
    return %c0_i32, %arg0 : i32, i32
  }
}

</mosaic_0001>

<bundles_post_ra>
// kernel: tpu_custom_call.1
= control target key start
LH: loop header
LB: loop body
LE: loop exit
PB: predicated region body
PF: predicated region fallthrough
CT: control target
= control target key end

     0   :  { %s962_s0 = inlined_call_operand.vmem [shape: bf16[8,128], index: 0, kind: input, shape index: {}]   ;;  %s963_s1 = inlined_call_operand.vmem [shape: f32[4,128], index: 1, kind: input, shape index: {}]   ;;  %s964_s2 = inlined_call_operand.vmem [shape: bf16[32,8], index: 2, kind: input, shape index: {}]   ;;  %s965_s3 = inlined_call_operand.vmem [shape: bf16[97,12], index: 3, kind: input, shape index: {}]   ;;  %s966_s4 = inlined_call_operand.vmem [shape: f32[32,1], index: 4, kind: input, shape index: {}]   ;;  %s967_s5 = inlined_call_operand.vmem [shape: bf16[32,32], index: 5, kind: input, shape index: {}]   ;;  %s968_s6 = inlined_call_operand.vmem [shape: f32[32,1], index: 6, kind: input, shape index: {}]   ;;  %s969_s7 = inlined_call_operand.vmem [shape: bf16[32,32], index: 7, kind: input, shape index: {}]   ;;  %s970_s8 = inlined_call_operand.vmem [shape: f32[32,1], index: 8, kind: input, shape index: {}]   ;;  %s971_s9 = inlined_call_operand.vmem [shape: bf16[32,1], index: 9, kind: input, shape index: {}]   ;;  %s972_s10 = inlined_call_operand.<no memory space> [shape: f32[1,1], index: 10, kind: input, shape index: {}]   ;;  %s973_s11 = inlined_call_operand.hbm [shape: f32[1,128], index: 11, kind: output, shape index: {}]  }
   0x1   :  { %v16_v0 = vstv %s972_s10 }
   0x2   :  { %17 = vst [vmem:[#allocation2] sm:$0x1] %v16_v0 }
   0x3   :  { %v42_v1 = vld [vmem:[%s963_s1] sm:$0xf]  ;;  %v755_v2 = vmov 0.0   ;;  %vm756_vm0 = vmmov 0   ;;  %vm48_vm1 = vcmask 1043456   ;;  %vm119_vm2 = vcmask 1045504  }
   0x4   :  { %704 = vmatprep.subr.bf16.mxu1 %v755_v2  ;;  %v43_v3 = vmul.f32 %v42_v1, %v42_v1  ;;  %674 = vmatprep.mubr.msk.bf16.mxu1 %vm756_vm0, %v755_v2  ;;  %v44_v4 = vand.u32 2147483647, %v42_v1  ;;  %v215_v8 = vld [vmem:[%s962_s0] sm:$0xf]  ;;  %v757_v9 = vmov 0   ;;  %v718_v12 = vld [vmem:[%s965_s3 + $0x28] sm:$0xff]  }
   0x5   :  { %652 = vmatprep.subr.bf16.mxu0 %v755_v2  ;;  %654 = vmatprep.mubr.msk.bf16.mxu0 %vm756_vm0, %v755_v2  ;;  %v285_v10 = vld [vmem:[%s966_s4] sm:$0xff]  ;;  %v287_v14 = vld [vmem:[%s966_s4 + $0x10] sm:$0xff]  ;;  %vm97_vm3 = vcmask 97280   ;;  %v234_v15 = vsel %vm48_vm1, %v215_v8, 0  ;;  %v286_v16 = vld [vmem:[%s966_s4 + $0x8] sm:$0xff] }
   0x6   :  { %v46_v5 = vrot.slane %v43_v3, 4  ;;  %711 = vset.pattern.permute.xlu0 %v757_v9  ;;  %712 = vset.pattern.permute.xlu1 %v757_v9  ;;  %v719_v13 = vld [vmem:[%s965_s3] sm:$0xff]   ;;  %v288_v17 = vld [vmem:[%s966_s4 + $0x18] sm:$0xff]  ;;  %v720_v19 = vld [vmem:[%s965_s3 + $0x30] ss:$0 sps:$4 sm:$0x11]  }
   0x7   :  { %291 = vperm.xlu0 %711, %v285_v10   ;;  %301 = vperm.xlu1 %712, %v287_v14   ;;  %v389_v18 = vld [vmem:[%s968_s6] sm:$0xff]  ;;  %v722_v20 = vld [vmem:[%s965_s3 + $0x8] sm:$0xff]  }
   0x8   :  { %v49_v6 = vsel %vm48_vm1, %v42_v1, %v46_v5  ;;  %v390_v21 = vld [vmem:[%s968_s6 + $0x8] sm:$0xff]  ;;  %v721_v22 = vld [vmem:[%s964_s2] sm:$0xff]  }
   0x9   :  { %v50_v7 = vpack.c.bf16 %v44_v4, %v49_v6 }
   0xb   :  { %v121_v11 = vsel %vm119_vm2, %v50_v7, 0  ;;  %296 = vperm.xlu0 %711, %v286_v16   ;;  %306 = vperm.xlu1 %712, %v288_v17  }
   0xc   :  { %705 = vmatpush3.bf16.msra.mxu1 %v121_v11  ;;  %653 = vmatpush3.bf16.msra.mxu0 %v121_v11 }
   0xd   :  { %706 = vmatprep.subr.msk.bf16.mxu1 %vm48_vm1, %v215_v8 }
   0xf   :  { %675 = vmatmul.mubr.msk.bf16.vlgmr.msra.gmra.mrb[0].mxu1 %vm97_vm3, %v718_v12  ;;  %655 = vmatmul.mubr.msk.bf16.vlgmr.msra.gmra.mrb[0].mxu0 %vm97_vm3, %v719_v13 }
  0x10   :  { %683 = vmatpush3.bf16.msra.mxu1 %v234_v15  ;;  %678 = vmatprep.mubr.msk.bf16.mxu1 %vm756_vm0, %v755_v2 }
  0x11   :  { %658 = vmatprep.mubr.msk.bf16.mxu0 %vm756_vm0, %v755_v2 }
  0x12   :  { %18 = vsyncpa [#allocation4], 0  ;;  %vm226_vm4 = vcmask 64512   ;;  %395 = vperm.xlu0 %711, %v389_v18   ;;  %400 = vperm.xlu1 %712, %v390_v21   ;;  %v391_v23 = vld [vmem:[%s968_s6 + $0x10] sm:$0xff]  ;;  %v392_v24 = vld [vmem:[%s968_s6 + $0x18] sm:$0xff]  ;;  %vm333_vm5 = vcmask 261120  }
  0x13   :  { %v492_v25 = vld [vmem:[%s970_s8] sm:$0xff]  ;;  %v723_v27 = vld [vmem:[%s964_s2 + $0x8] sm:$0xff]   ;;  %v494_v31 = vld [vmem:[%s970_s8 + $0x10] sm:$0xff] }
  0x14   :  { %v625_v26 = vld [vmem:[%s971_s9] sm:$0xff]   ;;  %v493_v28 = vld [vmem:[%s970_s8 + $0x8] sm:$0xff]  ;;  %v495_v32 = vld [vmem:[%s970_s8 + $0x18] sm:$0xff] }
  0x15   :  { %v626_v29 = vunpack.c.l.bf16 %v625_v26  ;;  %v627_v30 = vunpack.c.h.bf16 %v625_v26  ;;  %v632_v33 = vld [vmem:[%s971_s9 + $0x8] sm:$0xff]   ;;  %v572_v37 = vld [vmem:[#allocation2] sm:$0x1]  ;;  %v724_v38 = vld [vmem:[%s965_s3 + $0x10] sm:$0xff]  }
  0x16   :  { %405 = vperm.xlu0 %711, %v391_v23   ;;  %410 = vperm.xlu1 %712, %v392_v24   ;;  %v630_v35 = vunpack.c.l.bf16 %v632_v33  ;;  %v631_v36 = vunpack.c.h.bf16 %v632_v33  ;;  %v725_v39 = vld [vmem:[%s967_s5] sm:$0xff]   ;;  %v726_v40 = vld [vmem:[%s965_s3 + $0x18] sm:$0xff]   ;;  %v727_v15 = vld [vmem:[%s967_s5 + $0x8] sm:$0xff]  }
  0x17   :  { %679 = vmatmul.mubr.msk.bf16.gmra.mrb[4].mxu1 %vm97_vm3, %v720_v19  ;;  %659 = vmatmul.mubr.msk.bf16.gmra.mrb[4].mxu0 %vm97_vm3, %v722_v20  ;;  %v713_v34 = vpack.i.bf16 %v627_v30, %v626_v29  ;;  %v728_v24 = vld [vmem:[%s965_s3 + $0x20] sm:$0xff]  }
  0x18   :  { %684 = vmatprep.mubr.msk.bf16.mxu1 %vm226_vm4, %v721_v22  ;;  %662 = vmatprep.mubr.msk.bf16.mxu0 %vm756_vm0, %v755_v2 }
  0x1a   :  { %498 = vperm.xlu0 %711, %v492_v25   ;;  %503 = vperm.xlu1 %712, %v493_v28   ;;  %v729_v25 = vld [vmem:[%s969_s7] sm:$0xff]  }
  0x1e   :  { %508 = vperm.xlu0 %711, %v494_v31   ;;  %513 = vperm.xlu1 %712, %v495_v32  }
  0x1f   :  { %685 = vmatmul.mubr.msk.bf16.vlgmr.msra.gmra.mrb[8].mxu1 %vm226_vm4, %v723_v27  ;;  %663 = vmatmul.mubr.msk.bf16.gmra.mrb[8].mxu0 %vm97_vm3, %v724_v38 }
  0x20   :  { %666 = vmatprep.mubr.msk.bf16.mxu0 %vm756_vm0, %v755_v2  ;;  %692 = vmatprep.mubr.msk.bf16.mxu1 %vm333_vm5, %v725_v39 }
  0x22   :  { %714 = vperm.xlu0 %711, %v713_v34   ;;  %550 = vperm.xlu1 %712, %v630_v35  }
  0x26   :  { %555 = vperm.xlu0 %711, %v631_v36   ;;  %575 = vperm.xlu1 %712, %v572_v37  }
  0x27   :  { %667 = vmatmul.mubr.msk.bf16.gmra.mrb[12].mxu0 %vm97_vm3, %v726_v40 }
  0x28   :  { %670 = vmatprep.mubr.msk.bf16.mxu0 %vm756_vm0, %v755_v2 }
  0x2f   :  { %671 = vmatmul.mubr.msk.bf16.gmra.mrb[16].mxu0 %vm97_vm3, %v728_v24 }
  0x86   :  { %v302_v57 = vpop.permute.xlu1 %301  ;;  %v292_v58 = vpop.permute.xlu0 %291 }
  0x8a   :  { %v307_v3 = vpop.permute.xlu1 %306  ;;  %v297_v6 = vpop.permute.xlu0 %296 }
  0x91   :  { %v396_v26 = vpop.permute.xlu0 %395  ;;  %v401_v27 = vpop.permute.xlu1 %400 }
  0x95   :  { %v406_v31 = vpop.permute.xlu0 %405  ;;  %v411_v37 = vpop.permute.xlu1 %410 }
  0xe2   :  { %v925_v41 = vpop.f32.mrb[0].mxu1  ;;  %v157_v42 = vpop.f32.mrb[0].mxu0 }
  0xe3   :  { %v676_v43 = vpop.f32.mrb[1].mxu1  ;;  %v656_v44 = vpop.f32.mrb[1].mxu0 }
  0xe4   :  { %v927_v45 = vpop.f32.mrb[2].mxu1  ;;  %v160_v46 = vpop.f32.mrb[2].mxu0 }
  0xe5   :  { %v677_v47 = vpop.f32.mrb[3].mxu1  ;;  %v657_v48 = vpop.f32.mrb[3].mxu0 }
  0xea   :  { %v929_v49 = vpop.f32.mrb[4].mxu1  ;;  %v165_v50 = vpop.f32.mrb[4].mxu0 }
  0xeb   :  { %v680_v51 = vpop.f32.mrb[5].mxu1  ;;  %v660_v52 = vpop.f32.mrb[5].mxu0 }
  0xec   :  { %v208_v53 = vpop.f32.mrb[6].mxu1  ;;  %v168_v54 = vpop.f32.mrb[6].mxu0  ;;  %v730_v51 = vld [vmem:[%s969_s7 + $0x8] sm:$0xff]   ;;  %s758_s7 = smov [#allocation3]  }
  0xed   :  { %v681_v55 = vpop.f32.mrb[7].mxu1  ;;  %v661_v56 = vpop.f32.mrb[7].mxu0  ;;  %s590_s23 = sshll.u32 %s758_s7, 4  ;;  %s591_s23 = int_to_ptr.vmem [resolvable:$true] %s590_s23 }
  0xee   :  { %v499_v56 = vpop.permute.xlu0 %498  ;;  %s731_s24 = scalar_lea.vmem %s591_s23, 16  ;;  %s735_s25 = scalar_lea.vmem %s591_s23, 32 }
  0xef   :  { %p732_p0 = scmp.ne.s32.totalorder %s591_s23, %s731_s24  ;;  %p736_p1 = scmp.lt.s32.totalorder %s591_s23, %s591_s23 }
  0xf0   :  { %p737_p2 = scmp.lt.s32.totalorder %s735_s25, %s731_s24 }
  0xf2   :  { %v686_v59 = vpop.f32.mrb[8].mxu1  ;;  %v173_v16 = vpop.f32.mrb[8].mxu0  ;;  %p738_p3 = por %p737_p2, %p736_p1 }
  0xf3   :  { %v279_v60 = vadd.f32 %v686_v59, %v165_v50  ;;  %v270_v61 = vpop.f32.mrb[9].mxu1  ;;  %v664_v17 = vpop.f32.mrb[9].mxu0 }
  0xf4   :  { %v271_v62 = vadd.f32 %v270_v61, %v157_v42  ;;  %v687_v63 = vpop.f32.mrb[10].mxu1  ;;  %v176_v18 = vpop.f32.mrb[10].mxu0  ;;  %p739_p4 = pnand %p738_p3, %p732_p0 }
  0xf5   :  { %v311_v0 = vadd.f32 %v302_v57, %v279_v60  ;;  %v282_v1 = vadd.f32 %v687_v63, %v168_v54  ;;  %v273_v2 = vpop.f32.mrb[11].mxu1  ;;  %v665_v19 = vpop.f32.mrb[11].mxu0 }
  0xf6   :  { %v309_v4 = vadd.f32 %v292_v58, %v271_v62  ;;  %v274_v5 = vadd.f32 %v273_v2, %v160_v46  ;;  %v504_v57 = vpop.permute.xlu1 %503  ;;  %v509_v61 = vpop.permute.xlu0 %508 }
  0xf7   :  { %v312_v7 = vadd.f32 %v307_v3, %v282_v1  ;;  %v315_v9 = vmax.f32 %v311_v0, 0.0 }
  0xf8   :  { %v310_v8 = vadd.f32 %v297_v6, %v274_v5  ;;  %v313_v11 = vmax.f32 %v309_v4, 0.0 }
  0xf9   :  { %v316_v10 = vmax.f32 %v312_v7, 0.0 }
  0xfa   :  { %v314_v12 = vmax.f32 %v310_v8, 0.0  ;;  %v181_v20 = vpop.f32.mrb[12].mxu0  ;;  %v514_v3 = vpop.permute.xlu1 %513 }
  0xfb   :  { %v318_v13 = vpack.c.bf16 %v316_v10, %v315_v9  ;;  %v668_v21 = vpop.f32.mrb[13].mxu0 }
  0xfc   :  { %v317_v14 = vpack.c.bf16 %v314_v12, %v313_v11  ;;  %v184_v22 = vpop.f32.mrb[14].mxu0 }
  0xfd   :  { %v669_v23 = vpop.f32.mrb[15].mxu0 }
  0xfe   :  { %688 = vmatprep.subr.bf16.mxu1 %v317_v14  ;;  %v551_v21 = vpop.permute.xlu1 %550 }
  0xff   :  { %689 = vmatpush3.bf16.msra.mxu1 %v317_v14 }
 0x100   :  { %690 = vmatprep.subr.bf16.mxu1 %v318_v13 }
 0x102   :  { %v189_v52 = vpop.f32.mrb[16].mxu0 }
 0x103   :  { %691 = vmatpush3.bf16.msra.mxu1 %v318_v13  ;;  %v672_v53 = vpop.f32.mrb[17].mxu0  ;;  %v715_v13 = vpop.permute.xlu0 %714 }
 0x104   :  { %v192_v54 = vpop.f32.mrb[18].mxu0  ;;  %v717_v14 = vunpack.i.h.bf16 %v715_v13 }
 0x105   :  { %v673_v55 = vpop.f32.mrb[19].mxu0 }
 0x106   :  { %693 = vmatmul.mubr.msk.bf16.vlgmr.msra.gmra.mrb[12].mxu1 %vm333_vm5, %v727_v15  ;;  %v716_v15 = vunpack.i.l.bf16 %v715_v13 }
 0x107   :  { %700 = vmatprep.mubr.msk.bf16.mxu1 %vm333_vm5, %v729_v25  ;;  %v556_v24 = vpop.permute.xlu0 %555 }
 0x1d9   :  { %v694_v28 = vpop.f32.mrb[12].mxu1 }
 0x1da   :  { %v383_v29 = vadd.f32 %v694_v28, %v181_v20  ;;  %v374_v30 = vpop.f32.mrb[13].mxu1  ;;  %v578_v28 = vlaneseq }
 0x1db   :  { %v375_v32 = vadd.f32 %v374_v30, %v173_v16  ;;  %v695_v33 = vpop.f32.mrb[14].mxu1 }
 0x1dc   :  { %v415_v34 = vadd.f32 %v406_v31, %v383_v29  ;;  %v386_v35 = vadd.f32 %v695_v33, %v184_v22  ;;  %v377_v36 = vpop.f32.mrb[15].mxu1  ;;  %v579_v31 = vshrl.u32 %v578_v28, 7 }
 0x1dd   :  { %v413_v38 = vadd.f32 %v396_v26, %v375_v32  ;;  %v378_v39 = vadd.f32 %v377_v36, %v176_v18  ;;  %v576_v36 = vpop.permute.xlu1 %575 }
 0x1de   :  { %v416_v40 = vadd.f32 %v411_v37, %v386_v35  ;;  %v419_v43 = vmax.f32 %v415_v34, 0.0  ;;  %v580_v34 = vsub.s32 0, %v579_v31 }
 0x1df   :  { %v414_v42 = vadd.f32 %v401_v27, %v378_v39  ;;  %v417_v46 = vmax.f32 %v413_v38, 0.0 }
 0x1e0   :  { %v420_v44 = vmax.f32 %v416_v40, 0.0  ;;  %v581_v38 = vrot.slane %v576_v36, %v580_v34 }
 0x1e1   :  { %v418_v47 = vmax.f32 %v414_v42, 0.0 }
 0x1e2   :  { %v422_v48 = vpack.c.bf16 %v420_v44, %v419_v43 }
 0x1e3   :  { %v421_v50 = vpack.c.bf16 %v418_v47, %v417_v46 }
 0x1e5   :  { %696 = vmatprep.subr.bf16.mxu1 %v421_v50 }
 0x1e6   :  { %697 = vmatpush3.bf16.msra.mxu1 %v421_v50 }
 0x1e7   :  { %698 = vmatprep.subr.bf16.mxu1 %v422_v48 }
 0x1ea   :  { %699 = vmatpush3.bf16.msra.mxu1 %v422_v48 }
 0x1ed   :  { %701 = vmatmul.mubr.msk.bf16.vlgmr.msra.gmra.mrb[16].mxu1 %vm333_vm5, %v730_v51 }
 0x2c0   :  { %v702_v58 = vpop.f32.mrb[16].mxu1 }
 0x2c1   :  { %v486_v59 = vadd.f32 %v702_v58, %v925_v41  ;;  %v477_v60 = vpop.f32.mrb[17].mxu1 }
 0x2c2   :  { %v478_v62 = vadd.f32 %v477_v60, %v189_v52  ;;  %v703_v63 = vpop.f32.mrb[18].mxu1 }
 0x2c3   :  { %v518_v0 = vadd.f32 %v509_v61, %v486_v59  ;;  %v489_v1 = vadd.f32 %v703_v63, %v927_v45  ;;  %v480_v2 = vpop.f32.mrb[19].mxu1 }
 0x2c4   :  { %v516_v4 = vadd.f32 %v499_v56, %v478_v62  ;;  %v481_v5 = vadd.f32 %v480_v2, %v192_v54 }
 0x2c5   :  { %v519_v6 = vadd.f32 %v514_v3, %v489_v1  ;;  %v522_v8 = vmax.f32 %v518_v0, 0.0 }
 0x2c6   :  { %v517_v7 = vadd.f32 %v504_v57, %v481_v5  ;;  %v520_v10 = vmax.f32 %v516_v4, 0.0 }
 0x2c7   :  { %v523_v9 = vmax.f32 %v519_v6, 0.0 }
 0x2c8   :  { %v521_v11 = vmax.f32 %v517_v7, 0.0 }
 0x2c9   :  { %v525_v12 = vpack.c.bf16 %v523_v9, %v522_v8 }
 0x2ca   :  { %v524_v41 = vpack.c.bf16 %v521_v11, %v520_v10 }
 0x2cb   :  { %v536_v16 = vunpack.c.l.bf16 %v525_v12  ;;  %v537_v19 = vunpack.c.h.bf16 %v525_v12 }
 0x2cc   :  { %v534_v17 = vunpack.c.l.bf16 %v524_v41  ;;  %v535_v18 = vunpack.c.h.bf16 %v524_v41 }
 0x2cd   :  { %v560_v22 = vmul.f32 %v551_v21, %v536_v16  ;;  %v561_v25 = vmul.f32 %v556_v24, %v537_v19 }
 0x2ce   :  { %v558_v45 = vmul.f32 %v716_v15, %v534_v17  ;;  %v559_v20 = vmul.f32 %v717_v14, %v535_v18 }
 0x2d0   :  { %v562_v23 = vadd.f32 %v559_v20, %v558_v45 }
 0x2d2   :  { %v563_v26 = vadd.f32 %v562_v23, %v560_v22 }
 0x2d4   :  { %v564_v27 = vadd.f32 %v563_v26, %v561_v25 }
 0x2d6   :  { %v565_v29 = vrot.slane %v564_v27, 4 }
 0x2d8   :  { %v566_v30 = vadd.f32 %v565_v29, %v564_v27 }
 0x2da   :  { %v567_v32 = vrot.slane %v566_v30, 2 }
 0x2dc   :  { %v568_v33 = vadd.f32 %v567_v32, %v566_v30 }
 0x2de   :  { %v569_v35 = vrot.slane %v568_v33, 1 }
 0x2e0   :  { %v570_v37 = vadd.f32 %v569_v35, %v568_v33 }
 0x2e2   :  { %v571_v39 = vadd.f32 %v570_v37, %v929_v49 }
 0x2e4   :  { %v582_v40 = vadd.f32 %v581_v38, %v571_v39 }
 0x2e6   :  { %583 = vst [vmem:[#allocation3] sm:$0x1] %v582_v40 }
 0x2e7   :  { %742 = shalt.err (!%p739_p4)
}
 0x2e8   :  { %s743_s28 = scalar_lea.hbm %s973_s11, 16 }
 0x2e9   :  { %p744_p5 = scmp.ne.s32.totalorder %s973_s11, %s743_s28  ;;  %p747_p6 = scmp.lt.u32.totalorder %s743_s28, %s973_s11 }
 0x2eb   :  { %p749_p7 = pnand %p747_p6, %p744_p5 }
 0x2ed   :  { %752 = shalt.err (!%p749_p7)
}
 0x2ee   :  { %593 = dma.vmem_to_hbm [thread:$0]  %s591_s23, 16, %s973_s11, [#allocation4]  }
 0x2ef   :  { %753 = dma.done.wait [#allocation4], 16  }
 0x2f0   :  { %754 = vsyncadd [#allocation4], 4294967280 }
 0x2f1   :  { %597 = vsyncpa [#allocation4], 1 }

</bundles_post_ra>
